<compile_context>
chip_gen: v6e
topology: v6e:2x2x1
jax: 0.10.0
libtpu: 0.0.40
codegen_flags: <defaults>
</compile_context>

<pallas_src>
import jax
import jax.numpy as jnp
from jax.experimental import pallas as pl
from jax.experimental.pallas import tpu as pltpu


# -----------------------------------------------------------------------------
# Parameter preparation -- run ONCE per model, outside the per-step hot path.
# -----------------------------------------------------------------------------
def prepare_lstm2_params(w_ih, w_hh, b_ih, b_hh, param_dtype=jnp.float32):
    """Transpose / concatenate nn.LSTMCell parameters once.

    Args (PyTorch shapes): w_ih (4H, in), w_hh (4H, H), b_ih (4H,), b_hh (4H,)
    Returns dict with:
      w_cat : (in + H, 4H)  = [W_ih^T ; W_hh^T]   (single-step kernel)
      w_ih_t: (in, 4H)                            (hoisted input projection)
      w_hh_t: (H, 4H)                             (recurrent sequence kernel)
      bias  : (1, 4H) f32   = b_ih + b_hh
    """
    w_ih_t = jnp.transpose(w_ih).astype(param_dtype)
    w_hh_t = jnp.transpose(w_hh).astype(param_dtype)
    w_cat = jnp.concatenate([w_ih_t, w_hh_t], axis=0)
    bias = (b_ih + b_hh).astype(jnp.float32).reshape(1, -1)
    return dict(w_cat=w_cat, w_ih_t=w_ih_t, w_hh_t=w_hh_t, bias=bias)


# -----------------------------------------------------------------------------
# Shared gate math (f32 elementwise, PyTorch gate order [i, f, g, o]).
# -----------------------------------------------------------------------------
def _lstm_gates(gates, c):
    H = c.shape[-1]
    i_g = jax.nn.sigmoid(gates[:, 0 * H:1 * H])
    f_g = jax.nn.sigmoid(gates[:, 1 * H:2 * H])
    g_g = jnp.tanh(gates[:, 2 * H:3 * H])
    o_g = jax.nn.sigmoid(gates[:, 3 * H:4 * H])
    c_new = f_g * c + i_g * g_g
    h_new = o_g * jnp.tanh(c_new)
    return h_new, c_new


# -----------------------------------------------------------------------------
# Single-step kernel (matches LSTM2.forward exactly).
# -----------------------------------------------------------------------------
def _lstm_step_kernel(x_ref, h_ref, c_ref, w_ref, b_ref, h_out_ref, c_out_ref):
    # One MXU dot: [x | h] @ [W_ih^T ; W_hh^T]; f32 accumulation on the MXU.
    xh = jnp.concatenate([x_ref[...], h_ref[...]], axis=-1).astype(w_ref.dtype)
    gates = jnp.dot(xh, w_ref[...], preferred_element_type=jnp.float32)
    gates = gates + b_ref[...]                       # (1, 4H) broadcast
    c = c_ref[...].astype(jnp.float32)
    h_new, c_new = _lstm_gates(gates, c)
    h_out_ref[...] = h_new.astype(h_out_ref.dtype)
    c_out_ref[...] = c_new.astype(c_out_ref.dtype)


def lstm2_step(x_t, states, params):
    """Drop-in equivalent of LSTM2.forward for a single timestep.

    x_t: (B, input_size); states = (h_last, m_last), each (B, H).
    Returns (h_t, m_t).
    """
    h_last, m_last = states
    B, H = h_last.shape
    in_size = x_t.shape[1]
    K = in_size + H
    w_cat, bias = params["w_cat"], params["bias"]

    itemsize_w = jnp.dtype(w_cat.dtype).itemsize
    cost = pl.CostEstimate(
        flops=2 * B * K * 4 * H + 12 * B * H,
        transcendentals=5 * B * H,
        bytes_accessed=(B * in_size + 4 * B * H) * 4
        + w_cat.size * itemsize_w + bias.size * 4,
    )

    full = lambda shape: pl.BlockSpec(shape, lambda: tuple(0 for _ in shape))

    h_t, m_t = pl.pallas_call(
        _lstm_step_kernel,
        out_shape=(
            jax.ShapeDtypeStruct((B, H), h_last.dtype),
            jax.ShapeDtypeStruct((B, H), m_last.dtype),
        ),
        grid=(),
        in_specs=[
            full((B, in_size)),
            full((B, H)),
            full((B, H)),
            full((K, 4 * H)),
            full((1, 4 * H)),
        ],
        out_specs=(full((B, H)), full((B, H))),
        # Reuse the h/c buffers when stepping in place (decode loop).
        input_output_aliases={1: 0, 2: 1},
        cost_estimate=cost,
    )(x_t, h_last, m_last, w_cat, bias)
    return h_t, m_t


# -----------------------------------------------------------------------------
# Fused T-step recurrence: one pallas_call, weights resident, h/c in VMEM
# scratch, x-projection hoisted out of the sequential loop.
# -----------------------------------------------------------------------------
def _lstm_seq_kernel(xp_ref, h0_ref, c0_ref, whh_ref,
                     hseq_ref, cfin_ref, h_sc, c_sc):
    t = pl.program_id(0)

    @pl.when(t == 0)
    def _():
        h_sc[...] = h0_ref[...].astype(jnp.float32)
        c_sc[...] = c0_ref[...].astype(jnp.float32)

    # Recurrent half only: gates = (x @ W_ih^T + b)[hoisted] + h @ W_hh^T.
    gates = xp_ref[0] + jnp.dot(
        h_sc[...].astype(whh_ref.dtype), whh_ref[...],
        preferred_element_type=jnp.float32)
    h_new, c_new = _lstm_gates(gates, c_sc[...])

    # Carry states in f32 scratch (no bf16 round-trip drift across steps).
    h_sc[...] = h_new
    c_sc[...] = c_new
    hseq_ref[0] = h_new.astype(hseq_ref.dtype)
    cfin_ref[...] = c_new.astype(cfin_ref.dtype)


def lstm2_sequence(x_seq, h0, c0, params):
    """Run T LSTM2 steps in ONE pallas_call.

    x_seq: (T, B, input_size); h0/c0: (B, H).
    Returns (h_seq (T,B,H), h_T (B,H), c_T (B,H)).
    """
    T, B, in_size = x_seq.shape
    H = h0.shape[-1]
    w_ih_t, w_hh_t, bias = params["w_ih_t"], params["w_hh_t"], params["bias"]

    # Hoisted, non-recurrent input projection: one large MXU matmul (M = T*B)
    # instead of T tiny M=B matmuls inside the sequential loop.
    xp = (jnp.dot(x_seq.reshape(T * B, in_size).astype(w_ih_t.dtype), w_ih_t,
                  preferred_element_type=jnp.float32)
          + bias).reshape(T, B, 4 * H)

    h_seq, c_fin = pl.pallas_call(
        _lstm_seq_kernel,
        out_shape=(
            jax.ShapeDtypeStruct((T, B, H), h0.dtype),
            jax.ShapeDtypeStruct((B, H), c0.dtype),
        ),
        grid=(T,),
        in_specs=[
            pl.BlockSpec((1, B, 4 * H), lambda t: (t, 0, 0)),  # per-step preact
            pl.BlockSpec((B, H), lambda t: (0, 0)),            # h0 (resident)
            pl.BlockSpec((B, H), lambda t: (0, 0)),            # c0 (resident)
            pl.BlockSpec((H, 4 * H), lambda t: (0, 0)),        # W_hh^T (resident)
        ],
        out_specs=(
            pl.BlockSpec((1, B, H), lambda t: (t, 0, 0)),      # h_t per step
            pl.BlockSpec((B, H), lambda t: (0, 0)),            # final c (resident)
        ),
        scratch_shapes=[
            pltpu.VMEM((B, H), jnp.float32),   # carried h state
            pltpu.VMEM((B, H), jnp.float32),   # carried c state
        ],
        compiler_params=pltpu.CompilerParams(
            dimension_semantics=("arbitrary",)),   # sequential recurrence
    )(xp, h0, c0, w_hh_t)
    return h_seq, h_seq[-1], c_fin


# -----------------------------------------------------------------------------
# Pure-JAX reference reproducing torch.nn.LSTMCell semantics.
# -----------------------------------------------------------------------------
def lstm2_reference(x_t, h_last, m_last, w_ih, w_hh, b_ih, b_hh):
    gates = x_t @ w_ih.T + b_ih + h_last @ w_hh.T + b_hh
    H = h_last.shape[1]
    i_g = jax.nn.sigmoid(gates[:, 0 * H:1 * H])
    f_g = jax.nn.sigmoid(gates[:, 1 * H:2 * H])
    g_g = jnp.tanh(gates[:, 2 * H:3 * H])
    o_g = jax.nn.sigmoid(gates[:, 3 * H:4 * H])
    c_new = f_g * m_last + i_g * g_g
    h_new = o_g * jnp.tanh(c_new)
    return h_new, c_new


if __name__ == "__main__":
    B = 8
    decoder_dim = 128               # H
    input_size = 2 * decoder_dim    # x_t = [c_t ; h_t^1]
    T = 8                           # sequence length for the fused kernel

    key = jax.random.PRNGKey(0)
    ks = jax.random.split(key, 8)

    # nn.LSTMCell-style init (uniform +/- 1/sqrt(H)).
    bound = 1.0 / (decoder_dim ** 0.5)
    u = lambda k, shape: jax.random.uniform(
        k, shape, dtype=jnp.float32, minval=-bound, maxval=bound)

    w_ih = u(ks[0], (4 * decoder_dim, input_size))
    w_hh = u(ks[1], (4 * decoder_dim, decoder_dim))
    b_ih = u(ks[2], (4 * decoder_dim,))
    b_hh = u(ks[3], (4 * decoder_dim,))

    x_t = jax.random.normal(ks[4], (B, input_size), dtype=jnp.float32)
    h_last = jax.random.normal(ks[5], (B, decoder_dim), dtype=jnp.float32)
    m_last = jax.random.normal(ks[6], (B, decoder_dim), dtype=jnp.float32)
    x_seq = jax.random.normal(ks[7], (T, B, input_size), dtype=jnp.float32)

    # References (computed up front).
    h_ref, m_ref = lstm2_reference(x_t, h_last, m_last, w_ih, w_hh, b_ih, b_hh)
    hs_ref = []
    h_r, c_r = h_last, m_last
    for t in range(T):
        h_r, c_r = lstm2_reference(x_seq[t], h_r, c_r, w_ih, w_hh, b_ih, b_hh)
        hs_ref.append(h_r)
    hs_ref = jnp.stack(hs_ref, axis=0)

    # ---- f32 params: single-step kernel (module-equivalent forward) ----
    params_f32 = prepare_lstm2_params(w_ih, w_hh, b_ih, b_hh, jnp.float32)
    h_t, m_t = lstm2_step(x_t, (h_last, m_last), params_f32)
    jax.block_until_ready((h_t, m_t))
    assert jnp.allclose(h_t, h_ref, atol=1e-5, rtol=1e-5)
    assert jnp.allclose(m_t, m_ref, atol=1e-5, rtol=1e-5)

    # ---- bf16 MXU operands (f32 accumulate, f32 gate math) ----
    params_bf16 = prepare_lstm2_params(w_ih, w_hh, b_ih, b_hh, jnp.bfloat16)
    h_b, m_b = lstm2_step(x_t, (h_last, m_last), params_bf16)
    jax.block_until_ready((h_b, m_b))
    assert jnp.allclose(h_b, h_ref, atol=5e-2, rtol=5e-2)
    assert jnp.allclose(m_b, m_ref, atol=5e-2, rtol=5e-2)

    # ---- fused T-step recurrence (one pallas_call, weights resident) ----
    h_seq, h_fin, c_fin = lstm2_sequence(x_seq, h_last, m_last, params_f32)
    jax.block_until_ready((h_seq, h_fin, c_fin))
    assert jnp.allclose(h_seq, hs_ref, atol=1e-4, rtol=1e-4)
    assert jnp.allclose(h_fin, hs_ref[-1], atol=1e-4, rtol=1e-4)
    assert jnp.allclose(c_fin, c_r, atol=1e-4, rtol=1e-4)

    print("KERNEL_OK")
</pallas_src>

<mosaic_0001>
module attributes {stable_mosaic.version = 11 : i64} {
  func.func @_lstm_step_kernel(%arg0: memref<8x256xf32, #tpu.memory_space<vmem>>, %arg1: memref<8x128xf32, #tpu.memory_space<vmem>>, %arg2: memref<8x128xf32, #tpu.memory_space<vmem>>, %arg3: memref<384x512xf32, #tpu.memory_space<vmem>>, %arg4: memref<1x512xf32, #tpu.memory_space<vmem>>, %arg5: memref<8x128xf32, #tpu.memory_space<vmem>>, %arg6: memref<8x128xf32, #tpu.memory_space<vmem>>) attributes {dimension_semantics = [], scalar_prefetch = 0 : i64, scratch_operands = 0 : i64, tpu.core_type = #tpu.core_type<tc>} {
    %c0 = arith.constant 0 : index
    %c0_0 = arith.constant 0 : index
    %0 = vector.load %arg0[%c0, %c0_0] : memref<8x256xf32, #tpu.memory_space<vmem>>, vector<8x256xf32>
    %c0_1 = arith.constant 0 : index
    %c0_2 = arith.constant 0 : index
    %1 = vector.load %arg1[%c0_1, %c0_2] : memref<8x128xf32, #tpu.memory_space<vmem>>, vector<8x128xf32>
    %2 = tpu.concatenate %0, %1 in 1 : vector<8x256xf32>, vector<8x128xf32> -> vector<8x384xf32>
    %c0_3 = arith.constant 0 : index
    %c0_4 = arith.constant 0 : index
    %3 = vector.load %arg3[%c0_3, %c0_4] : memref<384x512xf32, #tpu.memory_space<vmem>>, vector<384x512xf32>
    %cst = arith.constant dense<0.000000e+00> : vector<8x512xf32>
    %4 = tpu.matmul %2, %3, %cst {dimension_numbers = #tpu.dot_dimension_numbers<[1], [0], [0], [1], [0, 0, 1, 1], [], []>} : vector<8x384xf32>, vector<384x512xf32>, vector<8x512xf32> -> vector<8x512xf32>
    %c0_5 = arith.constant 0 : index
    %c0_6 = arith.constant 0 : index
    %5 = vector.load %arg4[%c0_5, %c0_6] : memref<1x512xf32, #tpu.memory_space<vmem>>, vector<1x512xf32>
    %6 = vector.broadcast %5 : vector<1x512xf32> to vector<8x512xf32>
    %7 = arith.addf %4, %6 : vector<8x512xf32>
    %c0_7 = arith.constant 0 : index
    %c0_8 = arith.constant 0 : index
    %8 = vector.load %arg2[%c0_7, %c0_8] : memref<8x128xf32, #tpu.memory_space<vmem>>, vector<8x128xf32>
    %9 = vector.extract_strided_slice %7 {offsets = [0, 0], sizes = [8, 128], strides = [1, 1]} : vector<8x512xf32> to vector<8x128xf32>
    %10 = arith.negf %9 : vector<8x128xf32>
    %11 = math.exp %10 : vector<8x128xf32>
    %cst_9 = arith.constant 1.000000e+00 : f32
    %12 = vector.broadcast %cst_9 : f32 to vector<8x128xf32>
    %13 = arith.addf %12, %11 : vector<8x128xf32>
    %14 = arith.divf %12, %13 : vector<8x128xf32>
    %15 = vector.extract_strided_slice %7 {offsets = [0, 128], sizes = [8, 128], strides = [1, 1]} : vector<8x512xf32> to vector<8x128xf32>
    %16 = arith.negf %15 : vector<8x128xf32>
    %17 = math.exp %16 : vector<8x128xf32>
    %cst_10 = arith.constant 1.000000e+00 : f32
    %18 = vector.broadcast %cst_10 : f32 to vector<8x128xf32>
    %19 = arith.addf %18, %17 : vector<8x128xf32>
    %20 = arith.divf %18, %19 : vector<8x128xf32>
    %21 = vector.extract_strided_slice %7 {offsets = [0, 256], sizes = [8, 128], strides = [1, 1]} : vector<8x512xf32> to vector<8x128xf32>
    %22 = math.tanh %21 : vector<8x128xf32>
    %23 = vector.extract_strided_slice %7 {offsets = [0, 384], sizes = [8, 128], strides = [1, 1]} : vector<8x512xf32> to vector<8x128xf32>
    %24 = arith.negf %23 : vector<8x128xf32>
    %25 = math.exp %24 : vector<8x128xf32>
    %cst_11 = arith.constant 1.000000e+00 : f32
    %26 = vector.broadcast %cst_11 : f32 to vector<8x128xf32>
    %27 = arith.addf %26, %25 : vector<8x128xf32>
    %28 = arith.divf %26, %27 : vector<8x128xf32>
    %29 = arith.mulf %20, %8 : vector<8x128xf32>
    %30 = arith.mulf %14, %22 : vector<8x128xf32>
    %31 = arith.addf %29, %30 : vector<8x128xf32>
    %32 = math.tanh %31 : vector<8x128xf32>
    %33 = arith.mulf %28, %32 : vector<8x128xf32>
    %c0_12 = arith.constant 0 : index
    %c0_13 = arith.constant 0 : index
    %34 = vector.load %arg5[%c0_12, %c0_13] : memref<8x128xf32, #tpu.memory_space<vmem>>, vector<8x128xf32>
    tpu.vector_store %arg5[%c0_12, %c0_13], %33 {strides = array<i32>} : memref<8x128xf32, #tpu.memory_space<vmem>>, vector<8x128xf32>,
    %c0_14 = arith.constant 0 : index
    %c0_15 = arith.constant 0 : index
    %35 = vector.load %arg6[%c0_14, %c0_15] : memref<8x128xf32, #tpu.memory_space<vmem>>, vector<8x128xf32>
    tpu.vector_store %arg6[%c0_14, %c0_15], %31 {strides = array<i32>} : memref<8x128xf32, #tpu.memory_space<vmem>>, vector<8x128xf32>,
    return
  }
}

</mosaic_0001>

<bundles_post_ra>
// kernel: tpu_custom_call.1
= control target key start
LH: loop header
LB: loop body
LE: loop exit
PB: predicated region body
PF: predicated region fallthrough
CT: control target
= control target key end

     0   :  { %12 = vsyncpa [#allocation3], 0  ;;  %s835_s0 = inlined_call_operand.vmem [shape: f32[8,256], index: 0, kind: input, shape index: {}]   ;;  %s836_s1 = inlined_call_operand.hbm [shape: f32[8,128], index: 1, kind: input, shape index: {}, may-alias: {1,5}]   ;;  %s837_s2 = inlined_call_operand.hbm [shape: f32[8,128], index: 2, kind: input, shape index: {}, may-alias: {2,6}]   ;;  %s838_s3 = inlined_call_operand.hbm [shape: f32[384,512], index: 3, kind: input, shape index: {}]   ;;  %s839_s4 = inlined_call_operand.vmem [shape: f32[1,512], index: 4, kind: input, shape index: {}]   ;;  %s840_s5 = inlined_call_operand.hbm [shape: f32[8,128], index: 5, kind: output, shape index: {0}, may-alias: {1,5}]   ;;  %s841_s6 = inlined_call_operand.hbm [shape: f32[8,128], index: 6, kind: output, shape index: {1}, may-alias: {2,6}]  }
   0x1   :  { %13 = vsyncpa [#allocation6], 0 }
   0x2   :  { %14 = vsyncpa [#allocation4], 0 }
   0x3   :  { %15 = vsyncpa [#allocation10], 0  ;;  %s754_s21 = smov [#allocation5]   ;;  %s755_s23 = smov [#allocation2]  }
   0x4   :  { %s34_s22 = sshll.u32 %s754_s21, 4  ;;  %s24_s24 = sshll.u32 %s755_s23, 4  ;;  %s35_s22 = int_to_ptr.vmem [resolvable:$true] %s34_s22  ;;  %s25_s24 = int_to_ptr.vmem [resolvable:$true] %s24_s24 }
   0x5   :  { %s654_s25 = scalar_lea.vmem %s35_s22, 128  ;;  %p659_p1 = scmp.lt.s32.totalorder %s35_s22, %s35_s22 }
   0x6   :  { %p655_p0 = scmp.ne.s32.totalorder %s35_s22, %s654_s25  ;;  %p660_p2 = scmp.lt.s32.totalorder %s654_s25, %s654_s25 }
   0x8   :  { %p661_p3 = por %p660_p2, %p659_p1 }
   0xa   :  { %p662_p4 = pnand %p661_p3, %p655_p0 }
   0xc   :  { %665 = shalt.err (!%p662_p4)
}
   0xd   :  { %37 = dma.hbm_to_vmem [thread:$0]  %s837_s2, 128, %s35_s22, [#allocation6]  }
   0xe   :  { %s674_s28 = scalar_lea.vmem %s25_s24, 128  ;;  %p679_p6 = scmp.lt.s32.totalorder %s25_s24, %s25_s24 }
   0xf   :  { %p675_p5 = scmp.ne.s32.totalorder %s25_s24, %s674_s28  ;;  %p680_p7 = scmp.lt.s32.totalorder %s674_s28, %s674_s28 }
  0x11   :  { %p681_p8 = por %p680_p7, %p679_p6 }
  0x13   :  { %p682_p9 = pnand %p681_p8, %p675_p5 }
  0x15   :  { %685 = shalt.err (!%p682_p9)
}
  0x16   :  { %27 = dma.hbm_to_vmem [thread:$0]  %s836_s1, 128, %s25_s24, [#allocation3]  }
  0x17   :  { %s756_s7 = smov [#allocation7]  }
  0x18   :  { %s43_s8 = sshll.u32 %s756_s7, 4  ;;  %s44_s8 = int_to_ptr.vmem [resolvable:$true] %s43_s8 }
  0x19   :  { %s694_s9 = scalar_lea.vmem %s44_s8, 24576  ;;  %p699_p11 = scmp.lt.s32.totalorder %s44_s8, %s44_s8 }
  0x1a   :  { %p695_p10 = scmp.ne.s32.totalorder %s44_s8, %s694_s9  ;;  %p700_p12 = scmp.lt.s32.totalorder %s694_s9, %s694_s9 }
  0x1c   :  { %p701_p13 = por %p700_p12, %p699_p11 }
  0x1e   :  { %p702_p0 = pnand %p701_p13, %p695_p10 }
  0x20   :  { %705 = shalt.err (!%p702_p0)
}
  0x21   :  { %s757_s2 = smov 512   ;;  %s758_s10 = smov 32  }
  0x22   :  { %49 = dma.hbm_to_vmem [thread:$0]  %s838_s3, 24576, %s44_s8, [#allocation6], %s757_s2, %s757_s2, %s758_s10  }
  0x23   :  { %746 = dma.done.wait [#allocation3], 128  }
  0x24   :  { %747 = vsyncadd [#allocation3], 4294967168 }
  0x25   :  { %748 = dma.done.wait [#allocation6], 24704  }
  0x26   :  { %749 = vsyncadd [#allocation6], 4294942592  ;;  %v759_v0 = vmov 0.0   ;;  %v125_v1 = vld [vmem:[#allocation7 + $0x1e8] sm:$0xff]  ;;  %v124_v3 = vld [vmem:[#allocation7 + $0x1e0] sm:$0xff] }
  0x27   :  { %413 = vmatprep.mubr.f32.mxu1 %v759_v0  ;;  %v253_v2 = vld [vmem:[#allocation7 + $0x5e8] sm:$0xff]  ;;  %278 = vmatprep.subr.mxu0 %v125_v1  ;;  %v252_v4 = vld [vmem:[#allocation7 + $0x5e0] sm:$0xff] }
  0x28   :  { %349 = vmatprep.subr.mxu1 %v253_v2  ;;  %v121_v5 = vld [vmem:[#allocation7 + $0x1c8] sm:$0xff]  ;;  %279 = vmatpush1.msra.mxu0 %v124_v3  ;;  %v120_v7 = vld [vmem:[#allocation7 + $0x1c0] sm:$0xff]  ;;  %v807_v3 = vld [vmem:[#allocation2] sm:$0xff] }
  0x29   :  { %v249_v6 = vld [vmem:[#allocation7 + $0x5c8] sm:$0xff]  ;;  %350 = vmatpush1.msra.mxu1 %v252_v4  ;;  %v248_v8 = vld [vmem:[#allocation7 + $0x5c0] sm:$0xff]  ;;  %280 = vmatprep.subr.mxu0 %v121_v5  ;;  %v127_v4 = vld [vmem:[#allocation7 + $0x1f8] sm:$0xff] }
  0x2a   :  { %v117_v9 = vld [vmem:[#allocation7 + $0x1a8] sm:$0xff]  ;;  %351 = vmatprep.subr.mxu1 %v249_v6  ;;  %v116_v11 = vld [vmem:[#allocation7 + $0x1a0] sm:$0xff]  ;;  %281 = vmatpush1.msra.mxu0 %v120_v7  ;;  %v126_v6 = vld [vmem:[#allocation7 + $0x1f0] sm:$0xff] }
  0x2b   :  { %v245_v10 = vld [vmem:[#allocation7 + $0x5a8] sm:$0xff]  ;;  %v244_v12 = vld [vmem:[#allocation7 + $0x5a0] sm:$0xff]  ;;  %352 = vmatpush1.msra.mxu1 %v248_v8  ;;  %282 = vmatprep.subr.mxu0 %v117_v9  ;;  %v123_v8 = vld [vmem:[#allocation7 + $0x1d8] sm:$0xff] }
  0x2c   :  { %v113_v13 = vld [vmem:[#allocation7 + $0x188] sm:$0xff]  ;;  %353 = vmatprep.subr.mxu1 %v245_v10  ;;  %v112_v15 = vld [vmem:[#allocation7 + $0x180] sm:$0xff]  ;;  %283 = vmatpush1.msra.mxu0 %v116_v11  ;;  %v122_v10 = vld [vmem:[#allocation7 + $0x1d0] sm:$0xff] }
  0x2d   :  { %v241_v14 = vld [vmem:[#allocation7 + $0x588] sm:$0xff]  ;;  %v240_v16 = vld [vmem:[#allocation7 + $0x580] sm:$0xff]  ;;  %354 = vmatpush1.msra.mxu1 %v244_v12  ;;  %284 = vmatprep.subr.mxu0 %v113_v13  ;;  %v119_v12 = vld [vmem:[#allocation7 + $0x1b8] sm:$0xff] }
  0x2e   :  { %v109_v17 = vld [vmem:[#allocation7 + $0x168] sm:$0xff]  ;;  %355 = vmatprep.subr.mxu1 %v241_v14  ;;  %v108_v19 = vld [vmem:[#allocation7 + $0x160] sm:$0xff]  ;;  %285 = vmatpush1.msra.mxu0 %v112_v15  ;;  %v118_v14 = vld [vmem:[#allocation7 + $0x1b0] sm:$0xff] }
  0x2f   :  { %v237_v18 = vld [vmem:[#allocation7 + $0x568] sm:$0xff]  ;;  %v236_v20 = vld [vmem:[#allocation7 + $0x560] sm:$0xff]  ;;  %356 = vmatpush1.msra.mxu1 %v240_v16  ;;  %286 = vmatprep.subr.mxu0 %v109_v17  ;;  %v115_v16 = vld [vmem:[#allocation7 + $0x198] sm:$0xff] }
  0x30   :  { %v105_v21 = vld [vmem:[#allocation7 + $0x148] sm:$0xff]  ;;  %357 = vmatprep.subr.mxu1 %v237_v18  ;;  %v104_v23 = vld [vmem:[#allocation7 + $0x140] sm:$0xff]  ;;  %287 = vmatpush1.msra.mxu0 %v108_v19  ;;  %v114_v18 = vld [vmem:[#allocation7 + $0x190] sm:$0xff] }
  0x31   :  { %v233_v22 = vld [vmem:[#allocation7 + $0x548] sm:$0xff]  ;;  %v232_v24 = vld [vmem:[#allocation7 + $0x540] sm:$0xff]  ;;  %358 = vmatpush1.msra.mxu1 %v236_v20  ;;  %288 = vmatprep.subr.mxu0 %v105_v21  ;;  %v111_v20 = vld [vmem:[#allocation7 + $0x178] sm:$0xff] }
  0x32   :  { %v101_v25 = vld [vmem:[#allocation7 + $0x128] sm:$0xff]  ;;  %359 = vmatprep.subr.mxu1 %v233_v22  ;;  %v100_v27 = vld [vmem:[#allocation7 + $0x120] sm:$0xff]  ;;  %289 = vmatpush1.msra.mxu0 %v104_v23  ;;  %v110_v22 = vld [vmem:[#allocation7 + $0x170] sm:$0xff] }
  0x33   :  { %v229_v26 = vld [vmem:[#allocation7 + $0x528] sm:$0xff]  ;;  %v228_v28 = vld [vmem:[#allocation7 + $0x520] sm:$0xff]  ;;  %360 = vmatpush1.msra.mxu1 %v232_v24  ;;  %290 = vmatprep.subr.mxu0 %v101_v25  ;;  %v107_v24 = vld [vmem:[#allocation7 + $0x158] sm:$0xff] }
  0x34   :  { %v97_v29 = vld [vmem:[#allocation7 + $0x108] sm:$0xff]  ;;  %361 = vmatprep.subr.mxu1 %v229_v26  ;;  %v96_v31 = vld [vmem:[#allocation7 + $0x100] sm:$0xff]  ;;  %291 = vmatpush1.msra.mxu0 %v100_v27  ;;  %v106_v26 = vld [vmem:[#allocation7 + $0x150] sm:$0xff] }
  0x35   :  { %v225_v30 = vld [vmem:[#allocation7 + $0x508] sm:$0xff]  ;;  %v224_v32 = vld [vmem:[#allocation7 + $0x500] sm:$0xff]  ;;  %362 = vmatpush1.msra.mxu1 %v228_v28  ;;  %292 = vmatprep.subr.mxu0 %v97_v29  ;;  %v103_v28 = vld [vmem:[#allocation7 + $0x138] sm:$0xff] }
  0x36   :  { %v93_v33 = vld [vmem:[#allocation7 + $0xe8] sm:$0xff]  ;;  %363 = vmatprep.subr.mxu1 %v225_v30  ;;  %v92_v35 = vld [vmem:[#allocation7 + $0xe0] sm:$0xff]  ;;  %293 = vmatpush1.msra.mxu0 %v96_v31  ;;  %v102_v30 = vld [vmem:[#allocation7 + $0x130] sm:$0xff] }
  0x37   :  { %v221_v34 = vld [vmem:[#allocation7 + $0x4e8] sm:$0xff]  ;;  %v220_v36 = vld [vmem:[#allocation7 + $0x4e0] sm:$0xff]  ;;  %364 = vmatpush1.msra.mxu1 %v224_v32  ;;  %294 = vmatprep.subr.mxu0 %v93_v33  ;;  %v99_v32 = vld [vmem:[#allocation7 + $0x118] sm:$0xff] }
  0x38   :  { %v89_v37 = vld [vmem:[#allocation7 + $0xc8] sm:$0xff]  ;;  %365 = vmatprep.subr.mxu1 %v221_v34  ;;  %v88_v39 = vld [vmem:[#allocation7 + $0xc0] sm:$0xff]  ;;  %295 = vmatpush1.msra.mxu0 %v92_v35  ;;  %v98_v34 = vld [vmem:[#allocation7 + $0x110] sm:$0xff] }
  0x39   :  { %v217_v38 = vld [vmem:[#allocation7 + $0x4c8] sm:$0xff]  ;;  %v216_v40 = vld [vmem:[#allocation7 + $0x4c0] sm:$0xff]  ;;  %366 = vmatpush1.msra.mxu1 %v220_v36  ;;  %296 = vmatprep.subr.mxu0 %v89_v37  ;;  %v95_v36 = vld [vmem:[#allocation7 + $0xf8] sm:$0xff] }
  0x3a   :  { %v85_v41 = vld [vmem:[#allocation7 + $0xa8] sm:$0xff]  ;;  %367 = vmatprep.subr.mxu1 %v217_v38  ;;  %v84_v43 = vld [vmem:[#allocation7 + $0xa0] sm:$0xff]  ;;  %297 = vmatpush1.msra.mxu0 %v88_v39  ;;  %v94_v38 = vld [vmem:[#allocation7 + $0xf0] sm:$0xff] }
  0x3b   :  { %v213_v42 = vld [vmem:[#allocation7 + $0x4a8] sm:$0xff]  ;;  %v212_v44 = vld [vmem:[#allocation7 + $0x4a0] sm:$0xff]  ;;  %368 = vmatpush1.msra.mxu1 %v216_v40  ;;  %298 = vmatprep.subr.mxu0 %v85_v41  ;;  %v91_v40 = vld [vmem:[#allocation7 + $0xd8] sm:$0xff] }
  0x3c   :  { %v81_v45 = vld [vmem:[#allocation7 + $0x88] sm:$0xff]  ;;  %369 = vmatprep.subr.mxu1 %v213_v42  ;;  %v80_v47 = vld [vmem:[#allocation7 + $0x80] sm:$0xff]  ;;  %299 = vmatpush1.msra.mxu0 %v84_v43  ;;  %v90_v42 = vld [vmem:[#allocation7 + $0xd0] sm:$0xff] }
  0x3d   :  { %v209_v46 = vld [vmem:[#allocation7 + $0x488] sm:$0xff]  ;;  %v208_v48 = vld [vmem:[#allocation7 + $0x480] sm:$0xff]  ;;  %370 = vmatpush1.msra.mxu1 %v212_v44  ;;  %300 = vmatprep.subr.mxu0 %v81_v45  ;;  %v87_v44 = vld [vmem:[#allocation7 + $0xb8] sm:$0xff] }
  0x3e   :  { %v77_v49 = vld [vmem:[#allocation7 + $0x68] sm:$0xff]  ;;  %371 = vmatprep.subr.mxu1 %v209_v46  ;;  %v76_v51 = vld [vmem:[#allocation7 + $0x60] sm:$0xff]  ;;  %301 = vmatpush1.msra.mxu0 %v80_v47  ;;  %v86_v46 = vld [vmem:[#allocation7 + $0xb0] sm:$0xff] }
  0x3f   :  { %v205_v50 = vld [vmem:[#allocation7 + $0x468] sm:$0xff]  ;;  %v204_v52 = vld [vmem:[#allocation7 + $0x460] sm:$0xff]  ;;  %372 = vmatpush1.msra.mxu1 %v208_v48  ;;  %302 = vmatprep.subr.mxu0 %v77_v49  ;;  %v83_v48 = vld [vmem:[#allocation7 + $0x98] sm:$0xff] }
  0x40   :  { %v73_v53 = vld [vmem:[#allocation7 + $0x48] sm:$0xff]  ;;  %373 = vmatprep.subr.mxu1 %v205_v50  ;;  %v72_v55 = vld [vmem:[#allocation7 + $0x40] sm:$0xff]  ;;  %303 = vmatpush1.msra.mxu0 %v76_v51  ;;  %v82_v50 = vld [vmem:[#allocation7 + $0x90] sm:$0xff] }
  0x41   :  { %v201_v54 = vld [vmem:[#allocation7 + $0x448] sm:$0xff]  ;;  %v200_v56 = vld [vmem:[#allocation7 + $0x440] sm:$0xff]  ;;  %374 = vmatpush1.msra.mxu1 %v204_v52  ;;  %304 = vmatprep.subr.mxu0 %v73_v53  ;;  %v79_v52 = vld [vmem:[#allocation7 + $0x78] sm:$0xff] }
  0x42   :  { %v69_v57 = vld [vmem:[#allocation7 + $0x28] sm:$0xff]  ;;  %375 = vmatprep.subr.mxu1 %v201_v54  ;;  %v68_v59 = vld [vmem:[#allocation7 + $0x20] sm:$0xff]  ;;  %305 = vmatpush1.msra.mxu0 %v72_v55  ;;  %v78_v54 = vld [vmem:[#allocation7 + $0x70] sm:$0xff] }
  0x43   :  { %v197_v58 = vld [vmem:[#allocation7 + $0x428] sm:$0xff]  ;;  %v196_v60 = vld [vmem:[#allocation7 + $0x420] sm:$0xff]  ;;  %376 = vmatpush1.msra.mxu1 %v200_v56  ;;  %306 = vmatprep.subr.mxu0 %v69_v57  ;;  %v75_v56 = vld [vmem:[#allocation7 + $0x58] sm:$0xff] }
  0x44   :  { %v65_v61 = vld [vmem:[#allocation7 + $0x8] sm:$0xff]  ;;  %377 = vmatprep.subr.mxu1 %v197_v58  ;;  %v64_v63 = vld [vmem:[#allocation7] sm:$0xff]  ;;  %307 = vmatpush1.msra.mxu0 %v68_v59  ;;  %v74_v58 = vld [vmem:[#allocation7 + $0x50] sm:$0xff] }
  0x45   :  { %v193_v62 = vld [vmem:[#allocation7 + $0x408] sm:$0xff]  ;;  %v192_v1 = vld [vmem:[#allocation7 + $0x400] sm:$0xff]  ;;  %378 = vmatpush1.msra.mxu1 %v196_v60  ;;  %308 = vmatprep.subr.mxu0 %v65_v61  ;;  %v71_v60 = vld [vmem:[#allocation7 + $0x38] sm:$0xff] }
  0x46   :  { %v189_v2 = vld [vmem:[#allocation7 + $0x3e8] sm:$0xff]  ;;  %379 = vmatprep.subr.mxu1 %v193_v62  ;;  %v188_v5 = vld [vmem:[#allocation7 + $0x3e0] sm:$0xff]  ;;  %309 = vmatpush1.msra.mxu0 %v64_v63  ;;  %v70_v62 = vld [vmem:[#allocation7 + $0x30] sm:$0xff] }
  0x47   :  { %380 = vmatpush1.msra.mxu1 %v192_v1  ;;  %v185_v7 = vld [vmem:[#allocation7 + $0x3c8] sm:$0xff]  ;;  %310 = vmatprep.subr.mxu0 %v189_v2  ;;  %v184_v9 = vld [vmem:[#allocation7 + $0x3c0] sm:$0xff]  ;;  %v67_v1 = vld [vmem:[#allocation7 + $0x18] sm:$0xff] }
  0x48   :  { %414 = vmatmul.mubr.f32.vlgmr.msra.gmra.mxu1 %v807_v3  ;;  %420 = vmatprep.subr.mxu1 %v127_v4  ;;  %v181_v11 = vld [vmem:[#allocation7 + $0x3a8] sm:$0xff]  ;;  %v180_v13 = vld [vmem:[#allocation7 + $0x3a0] sm:$0xff]  ;;  %v813_v4 = vld [vmem:[%s835_s0 + $0x8] sm:$0xff] }
  0x49   :  { %311 = vmatpush2.msra.mxu0 %v188_v5  ;;  %421 = vmatpush1.msra.mxu1 %v126_v6  ;;  %v177_v15 = vld [vmem:[#allocation7 + $0x388] sm:$0xff]  ;;  %v176_v17 = vld [vmem:[#allocation7 + $0x380] sm:$0xff]  ;;  %v66_v5 = vld [vmem:[#allocation7 + $0x10] sm:$0xff] }
  0x4a   :  { %312 = vmatprep.subr.mxu0 %v185_v7  ;;  %422 = vmatprep.subr.mxu1 %v123_v8  ;;  %v173_v19 = vld [vmem:[#allocation7 + $0x368] sm:$0xff]  ;;  %v172_v21 = vld [vmem:[#allocation7 + $0x360] sm:$0xff]  ;;  %v818_v6 = vld [vmem:[%s835_s0] sm:$0xff] }
  0x4b   :  { %313 = vmatpush2.msra.mxu0 %v184_v9  ;;  %423 = vmatpush1.msra.mxu1 %v122_v10  ;;  %v169_v23 = vld [vmem:[#allocation7 + $0x348] sm:$0xff]  ;;  %v168_v25 = vld [vmem:[#allocation7 + $0x340] sm:$0xff]  ;;  %v191_v7 = vld [vmem:[#allocation7 + $0x3f8] sm:$0xff] }
  0x4c   :  { %314 = vmatprep.subr.mxu0 %v181_v11  ;;  %424 = vmatprep.subr.mxu1 %v119_v12  ;;  %v165_v27 = vld [vmem:[#allocation7 + $0x328] sm:$0xff]  ;;  %v164_v29 = vld [vmem:[#allocation7 + $0x320] sm:$0xff]  ;;  %v255_v8 = vld [vmem:[#allocation7 + $0x5f8] sm:$0xff] }
  0x4d   :  { %315 = vmatpush2.msra.mxu0 %v180_v13  ;;  %425 = vmatpush1.msra.mxu1 %v118_v14  ;;  %v161_v31 = vld [vmem:[#allocation7 + $0x308] sm:$0xff]  ;;  %v160_v33 = vld [vmem:[#allocation7 + $0x300] sm:$0xff]  ;;  %v190_v9 = vld [vmem:[#allocation7 + $0x3f0] sm:$0xff] }
  0x4e   :  { %316 = vmatprep.subr.mxu0 %v177_v15  ;;  %426 = vmatprep.subr.mxu1 %v115_v16  ;;  %v157_v35 = vld [vmem:[#allocation7 + $0x2e8] sm:$0xff]  ;;  %v156_v37 = vld [vmem:[#allocation7 + $0x2e0] sm:$0xff]  ;;  %v254_v10 = vld [vmem:[#allocation7 + $0x5f0] sm:$0xff] }
  0x4f   :  { %317 = vmatpush2.msra.mxu0 %v176_v17  ;;  %427 = vmatpush1.msra.mxu1 %v114_v18  ;;  %v153_v39 = vld [vmem:[#allocation7 + $0x2c8] sm:$0xff]  ;;  %v152_v41 = vld [vmem:[#allocation7 + $0x2c0] sm:$0xff]  ;;  %v187_v11 = vld [vmem:[#allocation7 + $0x3d8] sm:$0xff] }
  0x50   :  { %318 = vmatprep.subr.mxu0 %v173_v19  ;;  %428 = vmatprep.subr.mxu1 %v111_v20  ;;  %v149_v43 = vld [vmem:[#allocation7 + $0x2a8] sm:$0xff]  ;;  %v148_v45 = vld [vmem:[#allocation7 + $0x2a0] sm:$0xff]  ;;  %v251_v12 = vld [vmem:[#allocation7 + $0x5d8] sm:$0xff] }
  0x51   :  { %319 = vmatpush2.msra.mxu0 %v172_v21  ;;  %429 = vmatpush1.msra.mxu1 %v110_v22  ;;  %v145_v47 = vld [vmem:[#allocation7 + $0x288] sm:$0xff]  ;;  %v144_v49 = vld [vmem:[#allocation7 + $0x280] sm:$0xff]  ;;  %v186_v13 = vld [vmem:[#allocation7 + $0x3d0] sm:$0xff] }
  0x52   :  { %320 = vmatprep.subr.mxu0 %v169_v23  ;;  %430 = vmatprep.subr.mxu1 %v107_v24  ;;  %v141_v51 = vld [vmem:[#allocation7 + $0x268] sm:$0xff]  ;;  %v140_v53 = vld [vmem:[#allocation7 + $0x260] sm:$0xff]  ;;  %v250_v14 = vld [vmem:[#allocation7 + $0x5d0] sm:$0xff] }
  0x53   :  { %321 = vmatpush2.msra.mxu0 %v168_v25  ;;  %431 = vmatpush1.msra.mxu1 %v106_v26  ;;  %v137_v55 = vld [vmem:[#allocation7 + $0x248] sm:$0xff]  ;;  %v136_v57 = vld [vmem:[#allocation7 + $0x240] sm:$0xff]  ;;  %v183_v15 = vld [vmem:[#allocation7 + $0x3b8] sm:$0xff] }
  0x54   :  { %322 = vmatprep.subr.mxu0 %v165_v27  ;;  %432 = vmatprep.subr.mxu1 %v103_v28  ;;  %v133_v59 = vld [vmem:[#allocation7 + $0x228] sm:$0xff]  ;;  %v132_v61 = vld [vmem:[#allocation7 + $0x220] sm:$0xff]  ;;  %v247_v16 = vld [vmem:[#allocation7 + $0x5b8] sm:$0xff] }
  0x55   :  { %323 = vmatpush2.msra.mxu0 %v164_v29  ;;  %433 = vmatpush1.msra.mxu1 %v102_v30  ;;  %v129_v63 = vld [vmem:[#allocation7 + $0x208] sm:$0xff]  ;;  %v128_v2 = vld [vmem:[#allocation7 + $0x200] sm:$0xff]  ;;  %v182_v17 = vld [vmem:[#allocation7 + $0x3b0] sm:$0xff] }
  0x56   :  { %324 = vmatprep.subr.mxu0 %v161_v31  ;;  %434 = vmatprep.subr.mxu1 %v99_v32  ;;  %v246_v18 = vld [vmem:[#allocation7 + $0x5b0] sm:$0xff]  ;;  %v179_v19 = vld [vmem:[#allocation7 + $0x398] sm:$0xff] }
  0x57   :  { %325 = vmatpush2.msra.mxu0 %v160_v33  ;;  %435 = vmatpush1.msra.mxu1 %v98_v34  ;;  %v243_v20 = vld [vmem:[#allocation7 + $0x598] sm:$0xff]  ;;  %v178_v21 = vld [vmem:[#allocation7 + $0x390] sm:$0xff] }
  0x58   :  { %326 = vmatprep.subr.mxu0 %v157_v35  ;;  %436 = vmatprep.subr.mxu1 %v95_v36  ;;  %v242_v22 = vld [vmem:[#allocation7 + $0x590] sm:$0xff]  ;;  %v175_v23 = vld [vmem:[#allocation7 + $0x378] sm:$0xff] }
  0x59   :  { %327 = vmatpush2.msra.mxu0 %v156_v37  ;;  %437 = vmatpush1.msra.mxu1 %v94_v38  ;;  %v239_v24 = vld [vmem:[#allocation7 + $0x578] sm:$0xff]  ;;  %v174_v25 = vld [vmem:[#allocation7 + $0x370] sm:$0xff] }
  0x5a   :  { %328 = vmatprep.subr.mxu0 %v153_v39  ;;  %438 = vmatprep.subr.mxu1 %v91_v40  ;;  %v238_v26 = vld [vmem:[#allocation7 + $0x570] sm:$0xff]  ;;  %v171_v27 = vld [vmem:[#allocation7 + $0x358] sm:$0xff] }
  0x5b   :  { %329 = vmatpush2.msra.mxu0 %v152_v41  ;;  %439 = vmatpush1.msra.mxu1 %v90_v42  ;;  %v235_v28 = vld [vmem:[#allocation7 + $0x558] sm:$0xff]  ;;  %v170_v29 = vld [vmem:[#allocation7 + $0x350] sm:$0xff] }
  0x5c   :  { %330 = vmatprep.subr.mxu0 %v149_v43  ;;  %440 = vmatprep.subr.mxu1 %v87_v44  ;;  %v234_v30 = vld [vmem:[#allocation7 + $0x550] sm:$0xff]  ;;  %v167_v31 = vld [vmem:[#allocation7 + $0x338] sm:$0xff] }
  0x5d   :  { %331 = vmatpush2.msra.mxu0 %v148_v45  ;;  %441 = vmatpush1.msra.mxu1 %v86_v46  ;;  %v231_v32 = vld [vmem:[#allocation7 + $0x538] sm:$0xff]  ;;  %v166_v33 = vld [vmem:[#allocation7 + $0x330] sm:$0xff] }
  0x5e   :  { %332 = vmatprep.subr.mxu0 %v145_v47  ;;  %442 = vmatprep.subr.mxu1 %v83_v48  ;;  %v230_v34 = vld [vmem:[#allocation7 + $0x530] sm:$0xff]  ;;  %v163_v35 = vld [vmem:[#allocation7 + $0x318] sm:$0xff] }
  0x5f   :  { %333 = vmatpush2.msra.mxu0 %v144_v49  ;;  %443 = vmatpush1.msra.mxu1 %v82_v50  ;;  %v227_v36 = vld [vmem:[#allocation7 + $0x518] sm:$0xff]  ;;  %v162_v37 = vld [vmem:[#allocation7 + $0x310] sm:$0xff] }
  0x60   :  { %334 = vmatprep.subr.mxu0 %v141_v51  ;;  %444 = vmatprep.subr.mxu1 %v79_v52  ;;  %v226_v38 = vld [vmem:[#allocation7 + $0x510] sm:$0xff]  ;;  %v159_v39 = vld [vmem:[#allocation7 + $0x2f8] sm:$0xff] }
  0x61   :  { %335 = vmatpush2.msra.mxu0 %v140_v53  ;;  %445 = vmatpush1.msra.mxu1 %v78_v54  ;;  %v223_v40 = vld [vmem:[#allocation7 + $0x4f8] sm:$0xff]  ;;  %v158_v41 = vld [vmem:[#allocation7 + $0x2f0] sm:$0xff] }
  0x62   :  { %336 = vmatprep.subr.mxu0 %v137_v55  ;;  %446 = vmatprep.subr.mxu1 %v75_v56  ;;  %v222_v42 = vld [vmem:[#allocation7 + $0x4f0] sm:$0xff]  ;;  %v155_v43 = vld [vmem:[#allocation7 + $0x2d8] sm:$0xff] }
  0x63   :  { %337 = vmatpush2.msra.mxu0 %v136_v57  ;;  %447 = vmatpush1.msra.mxu1 %v74_v58  ;;  %v219_v44 = vld [vmem:[#allocation7 + $0x4d8] sm:$0xff]  ;;  %v154_v45 = vld [vmem:[#allocation7 + $0x2d0] sm:$0xff] }
  0x64   :  { %338 = vmatprep.subr.mxu0 %v133_v59  ;;  %448 = vmatprep.subr.mxu1 %v71_v60  ;;  %v218_v46 = vld [vmem:[#allocation7 + $0x4d0] sm:$0xff]  ;;  %v151_v47 = vld [vmem:[#allocation7 + $0x2b8] sm:$0xff] }
  0x65   :  { %339 = vmatpush2.msra.mxu0 %v132_v61  ;;  %449 = vmatpush1.msra.mxu1 %v70_v62  ;;  %v215_v48 = vld [vmem:[#allocation7 + $0x4b8] sm:$0xff]  ;;  %v150_v49 = vld [vmem:[#allocation7 + $0x2b0] sm:$0xff] }
  0x66   :  { %340 = vmatprep.subr.mxu0 %v129_v63  ;;  %450 = vmatprep.subr.mxu1 %v67_v1  ;;  %v214_v50 = vld [vmem:[#allocation7 + $0x4b0] sm:$0xff]  ;;  %v147_v51 = vld [vmem:[#allocation7 + $0x298] sm:$0xff] }
  0x67   :  { %341 = vmatpush2.msra.mxu0 %v128_v2  ;;  %342 = vmatprep.mubr.f32.mxu0 %v813_v4  ;;  %v211_v52 = vld [vmem:[#allocation7 + $0x498] sm:$0xff]  ;;  %v146_v53 = vld [vmem:[#allocation7 + $0x290] sm:$0xff] }
  0x68   :  { %451 = vmatpush1.msra.mxu1 %v66_v5  ;;  %343 = vmatmul.mubr.f32.vlgmr.msra.gmra.mxu0 %v818_v6  ;;  %v210_v54 = vld [vmem:[#allocation7 + $0x490] sm:$0xff]  ;;  %v143_v55 = vld [vmem:[#allocation7 + $0x278] sm:$0xff] }
  0x69   :  { %452 = vmatprep.subr.mxu1 %v191_v7  ;;  %491 = vmatprep.subr.mxu0 %v255_v8  ;;  %v207_v56 = vld [vmem:[#allocation7 + $0x478] sm:$0xff]  ;;  %v142_v57 = vld [vmem:[#allocation7 + $0x270] sm:$0xff] }
  0x6a   :  { %453 = vmatpush2.msra.mxu1 %v190_v9  ;;  %492 = vmatpush1.msra.mxu0 %v254_v10  ;;  %v206_v58 = vld [vmem:[#allocation7 + $0x470] sm:$0xff]  ;;  %v139_v59 = vld [vmem:[#allocation7 + $0x258] sm:$0xff] }
  0x6b   :  { %454 = vmatprep.subr.mxu1 %v187_v11  ;;  %493 = vmatprep.subr.mxu0 %v251_v12  ;;  %v203_v60 = vld [vmem:[#allocation7 + $0x458] sm:$0xff]  ;;  %v138_v61 = vld [vmem:[#allocation7 + $0x250] sm:$0xff]  ;;  %v258_v11 = vlaneseq }
  0x6c   :  { %455 = vmatpush2.msra.mxu1 %v186_v13  ;;  %494 = vmatpush1.msra.mxu0 %v250_v14  ;;  %v202_v62 = vld [vmem:[#allocation7 + $0x450] sm:$0xff]  ;;  %v135_v63 = vld [vmem:[#allocation7 + $0x238] sm:$0xff] }
  0x6d   :  { %456 = vmatprep.subr.mxu1 %v183_v15  ;;  %495 = vmatprep.subr.mxu0 %v247_v16  ;;  %v199_v1 = vld [vmem:[#allocation7 + $0x438] sm:$0xff]  ;;  %v134_v2 = vld [vmem:[#allocation7 + $0x230] sm:$0xff]  ;;  %v259_v12 = vshrl.u32 %v258_v11, 7 }
  0x6e   :  { %457 = vmatpush2.msra.mxu1 %v182_v17  ;;  %496 = vmatpush1.msra.mxu0 %v246_v18  ;;  %v198_v5 = vld [vmem:[#allocation7 + $0x430] sm:$0xff]  ;;  %v131_v7 = vld [vmem:[#allocation7 + $0x218] sm:$0xff] }
  0x6f   :  { %458 = vmatprep.subr.mxu1 %v179_v19  ;;  %497 = vmatprep.subr.mxu0 %v243_v20  ;;  %v195_v8 = vld [vmem:[#allocation7 + $0x418] sm:$0xff]  ;;  %v130_v9 = vld [vmem:[#allocation7 + $0x210] sm:$0xff]  ;;  %v264_v13 = vsub.s32 1, %v259_v12  ;;  %v260_v14 = vsub.s32 0, %v259_v12 }
  0x70   :  { %459 = vmatpush2.msra.mxu1 %v178_v21  ;;  %498 = vmatpush1.msra.mxu0 %v242_v22  ;;  %v194_v10 = vld [vmem:[#allocation7 + $0x410] sm:$0xff] }
  0x71   :  { %460 = vmatprep.subr.mxu1 %v175_v23  ;;  %499 = vmatprep.subr.mxu0 %v239_v24  ;;  %v256_v15 = vld [vmem:[%s839_s4] sm:$0xf]  ;;  %v268_v24 = vsub.s32 2, %v259_v12  ;;  %s760_s4 = smov [#allocation9]  }
  0x72   :  { %461 = vmatpush2.msra.mxu1 %v174_v25  ;;  %500 = vmatpush1.msra.mxu0 %v238_v26  ;;  %v265_v17 = vrot.slane %v256_v15, %v264_v13  ;;  %v261_v18 = vrot.slane %v256_v15, %v260_v14  ;;  %v272_v25 = vsub.s32 3, %v259_v12  ;;  %s605_s16 = sshll.u32 %s760_s4, 4  ;;  %s606_s16 = int_to_ptr.vmem [resolvable:$true] %s605_s16 }
  0x73   :  { %462 = vmatprep.subr.mxu1 %v171_v27  ;;  %501 = vmatprep.subr.mxu0 %v235_v28  ;;  %v269_v28 = vrot.slane %v256_v15, %v268_v24  ;;  %s706_s17 = scalar_lea.vmem %s606_s16, 128  ;;  %p711_p2 = scmp.lt.s32.totalorder %s606_s16, %s606_s16 }
  0x74   :  { %463 = vmatpush2.msra.mxu1 %v170_v29  ;;  %502 = vmatpush1.msra.mxu0 %v234_v30  ;;  %v273_v30 = vrot.slane %v256_v15, %v272_v25  ;;  %p707_p1 = scmp.ne.s32.totalorder %s606_s16, %s706_s17  ;;  %p712_p3 = scmp.lt.s32.totalorder %s706_s17, %s706_s17 }
  0x75   :  { %464 = vmatprep.subr.mxu1 %v167_v31  ;;  %503 = vmatprep.subr.mxu0 %v231_v32 }
  0x76   :  { %465 = vmatpush2.msra.mxu1 %v166_v33  ;;  %504 = vmatpush1.msra.mxu0 %v230_v34  ;;  %p713_p4 = por %p712_p3, %p711_p2 }
  0x77   :  { %466 = vmatprep.subr.mxu1 %v163_v35  ;;  %505 = vmatprep.subr.mxu0 %v227_v36 }
  0x78   :  { %467 = vmatpush2.msra.mxu1 %v162_v37  ;;  %506 = vmatpush1.msra.mxu0 %v226_v38  ;;  %p714_p5 = pnand %p713_p4, %p707_p1 }
  0x79   :  { %468 = vmatprep.subr.mxu1 %v159_v39  ;;  %507 = vmatprep.subr.mxu0 %v223_v40 }
  0x7a   :  { %469 = vmatpush2.msra.mxu1 %v158_v41  ;;  %508 = vmatpush1.msra.mxu0 %v222_v42  ;;  %v562_v42 = vld [vmem:[#allocation5] sm:$0xff] }
  0x7b   :  { %470 = vmatprep.subr.mxu1 %v155_v43  ;;  %509 = vmatprep.subr.mxu0 %v219_v44 }
  0x7c   :  { %471 = vmatpush2.msra.mxu1 %v154_v45  ;;  %510 = vmatpush1.msra.mxu0 %v218_v46 }
  0x7d   :  { %472 = vmatprep.subr.mxu1 %v151_v47  ;;  %511 = vmatprep.subr.mxu0 %v215_v48 }
  0x7e   :  { %473 = vmatpush2.msra.mxu1 %v150_v49  ;;  %512 = vmatpush1.msra.mxu0 %v214_v50 }
  0x7f   :  { %474 = vmatprep.subr.mxu1 %v147_v51  ;;  %513 = vmatprep.subr.mxu0 %v211_v52 }
  0x80   :  { %475 = vmatpush2.msra.mxu1 %v146_v53  ;;  %514 = vmatpush1.msra.mxu0 %v210_v54 }
  0x81   :  { %476 = vmatprep.subr.mxu1 %v143_v55  ;;  %515 = vmatprep.subr.mxu0 %v207_v56 }
  0x82   :  { %477 = vmatpush2.msra.mxu1 %v142_v57  ;;  %516 = vmatpush1.msra.mxu0 %v206_v58 }
  0x83   :  { %478 = vmatprep.subr.mxu1 %v139_v59  ;;  %517 = vmatprep.subr.mxu0 %v203_v60 }
  0x84   :  { %479 = vmatpush2.msra.mxu1 %v138_v61  ;;  %518 = vmatpush1.msra.mxu0 %v202_v62 }
  0x85   :  { %480 = vmatprep.subr.mxu1 %v135_v63  ;;  %519 = vmatprep.subr.mxu0 %v199_v1 }
  0x86   :  { %481 = vmatpush2.msra.mxu1 %v134_v2  ;;  %520 = vmatpush1.msra.mxu0 %v198_v5 }
  0x87   :  { %482 = vmatprep.subr.mxu1 %v131_v7  ;;  %521 = vmatprep.subr.mxu0 %v195_v8 }
  0x88   :  { %483 = vmatpush2.msra.mxu1 %v130_v9  ;;  %484 = vmatprep.mubr.f32.mxu1 %v813_v4 }
  0x89   :  { %522 = vmatpush1.msra.mxu0 %v194_v10  ;;  %555 = vmatprep.mubr.f32.mxu0 %v759_v0 }
  0x8a   :  { %485 = vmatmul.mubr.f32.vlgmr.msra.gmra.mxu1 %v818_v6  ;;  %556 = vmatmul.mubr.f32.vlgmr.msra.gmra.mxu0 %v807_v3 }
 0x108   :  { %v415_v4 = vpop.f32.mrf.mxu1 }
 0x10a   :  { %v417_v0 = vpop.f32.mrf.mxu1 }
 0x128   :  { %v344_v16 = vpop.f32.mrf.mxu0 }
 0x129   :  { %v345_v21 = vadd.f32 %v344_v16, %v261_v18 }
 0x12a   :  { %v346_v19 = vpop.f32.mrf.mxu0 }
 0x12b   :  { %v347_v20 = vadd.f32 %v346_v19, %v265_v17  ;;  %v416_v6 = vadd.f32 %v415_v4, %v345_v21 }
 0x12d   :  { %v418_v22 = vadd.f32 %v417_v0, %v347_v20  ;;  %v619_v3 = vmul.f32 -1.442695, %v416_v6 }
 0x12f   :  { %v620_v23 = vmul.f32 -1.442695, %v418_v22 }
 0x131   :  { %630 = vpow2.f32 %v620_v23 }
 0x132   :  { %632 = vpow2.f32 %v619_v3 }
 0x13e   :  { %v631_v26 = vpop.eup %630 }
 0x13f   :  { %v633_v27 = vpop.eup %632  ;;  %v572_v29 = vadd.f32 1.0, %v631_v26 }
 0x140   :  { %v566_v31 = vadd.f32 1.0, %v633_v27 }
 0x141   :  { %634 = vrcp.f32 %v572_v29 }
 0x142   :  { %636 = vrcp.f32 %v566_v31 }
 0x14a   :  { %v486_v32 = vpop.f32.mrf.mxu1  ;;  %v557_v34 = vpop.f32.mrf.mxu0 }
 0x14b   :  { %v487_v33 = vadd.f32 %v486_v32, %v269_v28 }
 0x14c   :  { %v488_v35 = vpop.f32.mrf.mxu1  ;;  %v559_v38 = vpop.f32.mrf.mxu0 }
 0x14d   :  { %v558_v36 = vadd.f32 %v557_v34, %v487_v33  ;;  %v489_v37 = vadd.f32 %v488_v35, %v273_v30 }
 0x14e   :  { %v635_v41 = vpop.eup %634 }
 0x14f   :  { %638 = vtanh.f32 %v558_v36  ;;  %v560_v39 = vadd.f32 %v559_v38, %v489_v37  ;;  %v637_v43 = vpop.eup %636  ;;  %v582_v45 = vmul.f32 %v635_v41, %v562_v42 }
 0x151   :  { %v621_v40 = vmul.f32 -1.442695, %v560_v39 }
 0x153   :  { %640 = vpow2.f32 %v621_v40 }
 0x15c   :  { %v639_v44 = vpop.eup %638 }
 0x15d   :  { %v583_v46 = vmul.f32 %v639_v44, %v637_v43 }
 0x15f   :  { %v584_v47 = vadd.f32 %v583_v46, %v582_v45 }
 0x160   :  { %v641_v48 = vpop.eup %640 }
 0x161   :  { %588 = vst [vmem:[#allocation9] sm:$0xff] %v584_v47  ;;  %v579_v49 = vadd.f32 1.0, %v641_v48  ;;  %642 = vtanh.f32 %v584_v47 }
 0x162   :  { %717 = shalt.err (!%p714_p5)
}
 0x163   :  { %608 = dma.vmem_to_hbm [thread:$0]  %s606_s16, 128, %s841_s6, [#allocation10]   ;;  %644 = vrcp.f32 %v579_v49 }
 0x164   :  { %s761_s20 = smov [#allocation8]  }
 0x165   :  { %s595_s21 = sshll.u32 %s761_s20, 4  ;;  %s596_s21 = int_to_ptr.vmem [resolvable:$true] %s595_s21 }
 0x166   :  { %s726_s22 = scalar_lea.vmem %s596_s21, 128  ;;  %p731_p7 = scmp.lt.s32.totalorder %s596_s21, %s596_s21 }
 0x167   :  { %p727_p6 = scmp.ne.s32.totalorder %s596_s21, %s726_s22  ;;  %p732_p8 = scmp.lt.s32.totalorder %s726_s22, %s726_s22 }
 0x169   :  { %p733_p9 = por %p732_p8, %p731_p7 }
 0x16b   :  { %p734_p10 = pnand %p733_p9, %p727_p6 }
 0x16e   :  { %v643_v50 = vpop.eup %642 }
 0x170   :  { %v645_v51 = vpop.eup %644 }
 0x171   :  { %v586_v52 = vmul.f32 %v645_v51, %v643_v50 }
 0x173   :  { %587 = vst [vmem:[#allocation8] sm:$0xff] %v586_v52 }
 0x174   :  { %737 = shalt.err (!%p734_p10)
}
 0x175   :  { %598 = dma.vmem_to_hbm [thread:$0]  %s596_s21, 128, %s840_s5, [#allocation4]  }
 0x176   :  { %750 = dma.done.wait [#allocation4], 128  }
 0x177   :  { %751 = vsyncadd [#allocation4], 4294967168 }
 0x178   :  { %752 = dma.done.wait [#allocation10], 128  }
 0x179   :  { %753 = vsyncadd [#allocation10], 4294967168 }
 0x17a   :  { %615 = vsyncpa [#allocation3], 1 }
 0x17b   :  { %616 = vsyncpa [#allocation6], 1 }
 0x17c   :  { %617 = vsyncpa [#allocation4], 1 }
 0x17d   :  { %618 = vsyncpa [#allocation10], 1 }

</bundles_post_ra>
